<compile_context>
chip_gen: v7x
topology: tpu7x:2x2x1
jax: 0.10.0
libtpu: 0.0.40
codegen_flags: <defaults>
</compile_context>

<pallas_src>
from functools import partial

import numpy as np

import jax
import jax.numpy as jnp
from jax.experimental import pallas as pl
from jax.experimental.pallas import tpu as pltpu

_LANES = 128
_ACC_ROWS = 256            # accumulator tile rows; multiple of 8/16/32 sublane tiles
_SINGLE_BLOCK_ROWS = 2048  # slabs up to (2048, 128) run as one grid step
_MAX_BLOCK_ROWS = 8192     # streaming block: (8192, 128) f32 = 4 MiB per input


def _cdiv(a, b):
    return (a + b - 1) // b


def _round_up(x, m):
    return _cdiv(x, m) * m


def _detect_num_splits():
    """Leading 'parallel' grid-axis size: 1 on single-TC chips, 2 on multi-TC."""
    try:
        kind = jax.devices()[0].device_kind.lower()
    except Exception:
        return 1
    # v5e / v6e expose a single TensorCore per chip: a >1 split is just a
    # serial outer loop there (extra init/finalize + step overhead, no gain).
    if "lite" in kind or "v5e" in kind or "v6e" in kind:
        return 1
    # v4 / v5p / v7x have 2 TensorCores per device: let megacore shard the
    # leading "parallel" axis across them.
    return 2


def _detect_vmem_limit():
    """Generation-aware scoped-VMEM budget (headroom below physical VMEM)."""
    try:
        cap = int(pltpu.get_tpu_info().vmem_capacity_bytes)
    except Exception:
        cap = 64 * 1024 * 1024  # conservative (v7x-sized) fallback
    # Keep the double-buffered working set well under physical VMEM
    # (64 MiB/TC on v7x, 128 MiB on v5e/v6e).
    return max(16 * 1024 * 1024, min(cap - 16 * 1024 * 1024, 48 * 1024 * 1024))


_NUM_SPLITS = _detect_num_splits()
_VMEM_LIMIT = _detect_vmem_limit()


def _plan_layout(rows0, splits):
    """Choose (block_rows, acc_rows, steps, splits) for a (rows0, 128) slab."""
    if rows0 <= _SINGLE_BLOCK_ROWS:
        # One full-dim block (always a legal BlockSpec, any dtype), one step.
        return rows0, rows0, 1, 1
    per_split = _cdiv(rows0, splits)
    steps = _cdiv(per_split, _MAX_BLOCK_ROWS)
    block_rows = _round_up(_cdiv(per_split, steps), _ACC_ROWS)
    block_rows = min(block_rows, _MAX_BLOCK_ROWS,
                     (rows0 // _ACC_ROWS) * _ACC_ROWS)
    steps = _cdiv(per_split, block_rows)
    return block_rows, _ACC_ROWS, steps, splits


def _to_slab(x, rows0):
    """Flatten x (native dtype) into a (rows0, 128) lane-dense slab.

    Copy-free when numel % 128 == 0 (plain reshape of the contiguous ravel).
    Otherwise pads the tail to the next lane multiple — padded zeros contribute
    0 to both |.| and (.)^2, and identically padded operands give a zero diff.
    """
    flat = jnp.ravel(x)
    n = flat.shape[0]
    padded = rows0 * _LANES
    if padded != n:
        # TODO(synk): a copy is unavoidable here (lane re-alignment); only hit
        # when numel % 128 != 0.
        flat = jnp.pad(flat, (0, padded - n))
    return flat.reshape(rows0, _LANES)


# -----------------------------------------------------------------------------
# Kernels
# -----------------------------------------------------------------------------
def _make_sums_kernel(block_rows, acc_rows, need_abs, need_sq, pairwise):
    """Build a streaming-reduction kernel.

    pairwise=True : accumulates sum|a-b| and sum (a-b)^2
    pairwise=False: accumulates sum|x|   and sum x^2
    Only the sums selected by need_abs/need_sq are actually computed.
    """
    assert block_rows % acc_rows == 0
    n_sub = block_rows // acc_rows

    def kernel(nrows_ref, *refs):
        if pairwise:
            a_ref, b_ref, out_ref, acc_abs, acc_sq = refs
        else:
            a_ref, out_ref, acc_abs, acc_sq = refs
            b_ref = None

        split = pl.program_id(0)
        step = pl.program_id(1)
        steps = pl.num_programs(1)

        @pl.when(step == 0)
        def _init():
            if need_abs:
                acc_abs[...] = jnp.zeros_like(acc_abs)
            if need_sq:
                acc_sq[...] = jnp.zeros_like(acc_sq)

        valid_rows = nrows_ref[0]
        block_row0 = (split * steps + step) * block_rows
        row_ids = jax.lax.broadcasted_iota(jnp.int32, (acc_rows, _LANES), 0)

        # Static unrolled loop over acc_rows-sized chunks: the accumulator
        # read-modify-write stays small and fixed-size regardless of how big
        # the streaming block is (pure VPU work; a single cheap mask handles
        # the boundary block instead of host-side padding).
        for c in range(n_sub):
            r0 = c * acc_rows
            x = a_ref[r0:r0 + acc_rows, :].astype(jnp.float32)
            if pairwise:
                x = x - b_ref[r0:r0 + acc_rows, :].astype(jnp.float32)
            rows_left = valid_rows - (block_row0 + r0)
            x = jnp.where(row_ids < rows_left, x, 0.0)
            if need_abs:
                acc_abs[...] += jnp.abs(x)
            if need_sq:
                acc_sq[...] += x * x

        @pl.when(step == steps - 1)
        def _finalize():          # single XLU reduction + SMEM store per split
            out_ref[0, 0] = jnp.sum(acc_abs[...]) if need_abs else jnp.float32(0.0)
            out_ref[0, 1] = jnp.sum(acc_sq[...]) if need_sq else jnp.float32(0.0)

    return kernel


def _reduction_call(slabs, rows0, block_rows, acc_rows, steps, splits,
                    need_abs, need_sq):
    """Shared pallas_call plumbing for the 1- and 2-operand reduction kernels."""
    pairwise = len(slabs) == 2
    kernel = _make_sums_kernel(block_rows, acc_rows, need_abs, need_sq, pairwise)

    def in_map(c, i, nrows_ref):          # nrows_ref = scalar-prefetch operand
        return (c * steps + i, 0)

    in_specs = [pl.BlockSpec((block_rows, _LANES), in_map) for _ in slabs]
    nbytes = sum(int(s.size) * s.dtype.itemsize for s in slabs) + 8 * splits
    n_elems = rows0 * _LANES
    flops_per = 5 if pairwise else 4

    out = pl.pallas_call(
        kernel,
        out_shape=jax.ShapeDtypeStruct((splits, 2), jnp.float32),
        grid_spec=pltpu.PrefetchScalarGridSpec(
            num_scalar_prefetch=1,
            grid=(splits, steps),
            in_specs=in_specs,
            out_specs=pl.BlockSpec((1, 2), lambda c, i, nrows_ref: (c, 0),
                                   memory_space=pltpu.SMEM),
            scratch_shapes=[
                pltpu.VMEM((acc_rows, _LANES), jnp.float32),
                pltpu.VMEM((acc_rows, _LANES), jnp.float32),
            ],
        ),
        compiler_params=pltpu.CompilerParams(
            # TODO(synk): on v7x, verify in a trace that the leading axis is
            # actually sharded across both TensorCores; switch that axis to
            # pltpu.CORE_PARALLEL if it is not.
            dimension_semantics=("parallel", "arbitrary"),
            vmem_limit_bytes=_VMEM_LIMIT,
        ),
        cost_estimate=pl.CostEstimate(flops=flops_per * n_elems,
                                      transcendentals=0,
                                      bytes_accessed=nbytes),
    )(jnp.full((1,), rows0, dtype=jnp.int32), *slabs)
    # Tree-sum the per-split partials (also improves f32 accumulation accuracy).
    return jnp.sum(out[:, 0]), jnp.sum(out[:, 1])


@partial(jax.jit, static_argnames=("need_abs", "need_sq"))
def _pairwise_sums(a, b, *, need_abs=True, need_sq=True):
    """(sum|a-b|, sum(a-b)^2) over all elements, f32 accumulation."""
    n = a.size
    rows0 = max(1, _cdiv(n, _LANES))
    block_rows, acc_rows, steps, splits = _plan_layout(rows0, _NUM_SPLITS)
    slabs = [_to_slab(a, rows0), _to_slab(b, rows0)]
    return _reduction_call(slabs, rows0, block_rows, acc_rows, steps, splits,
                           need_abs, need_sq)


@partial(jax.jit, static_argnames=("need_abs", "need_sq"))
def _single_sums(p, *, need_abs=True, need_sq=True):
    """(sum|p|, sum p^2) over one parameter tensor, f32 accumulation."""
    n = p.size
    rows0 = max(1, _cdiv(n, _LANES))
    block_rows, acc_rows, steps, splits = _plan_layout(rows0, _NUM_SPLITS)
    slabs = [_to_slab(p, rows0)]
    return _reduction_call(slabs, rows0, block_rows, acc_rows, steps, splits,
                           need_abs, need_sq)


# -----------------------------------------------------------------------------
# Public API: mirrors Custom_LossFunction.forward
# -----------------------------------------------------------------------------
_LOSS_TYPES = ("RMSE", "MSE", "MAE", "MAE+MSE", "MAE+RMSE")
_REG_TYPES = ("L1", "L2", "L1+L2")


def custom_loss(prediction, target, *, loss_type="RMSE", loss_lambda=1.0,
                regular_type=None, regular_lambda=0.001, params=None):
    """JAX/Pallas port of Custom_LossFunction.forward.

    `params` plays the role of `model.parameters()`: a list of arrays used for
    the optional L1/L2 regularization penalty.
    """
    if loss_type not in _LOSS_TYPES:
        raise ValueError(f"Unsupported loss type: {loss_type}")
    need_abs = "MAE" in loss_type
    need_sq = "MSE" in loss_type        # catches MSE, RMSE, MAE+MSE, MAE+RMSE

    n = float(prediction.size)
    abs_sum, sq_sum = _pairwise_sums(prediction, target,
                                     need_abs=need_abs, need_sq=need_sq)
    mae = abs_sum / n
    mse = sq_sum / n

    if loss_type == "RMSE":
        loss = jnp.sqrt(mse)
    elif loss_type == "MSE":
        loss = mse
    elif loss_type == "MAE":
        loss = mae
    elif loss_type == "MAE+MSE":
        loss = mae + loss_lambda * mse
    else:  # "MAE+RMSE"
        loss = mae + loss_lambda * jnp.sqrt(mse)

    if regular_type and params:
        if regular_type not in _REG_TYPES:
            raise ValueError(
                f"Unsupported regularization type: {regular_type}")
        reg_abs = "L1" in regular_type
        reg_sq = "L2" in regular_type
        p_abs = jnp.float32(0.0)
        p_sq = jnp.float32(0.0)
        # One kernel launch per parameter — no host-side concatenation copy.
        for p in params:
            a_s, s_s = _single_sums(p, need_abs=reg_abs, need_sq=reg_sq)
            p_abs = p_abs + a_s
            p_sq = p_sq + s_s
        if regular_type == "L1":
            reg_penalty = p_abs
        elif regular_type == "L2":
            reg_penalty = p_sq
        else:  # "L1+L2"
            reg_penalty = p_abs + p_sq
        loss = loss + regular_lambda * reg_penalty

    return loss


# -----------------------------------------------------------------------------
# Pure-JAX reference (PyTorch semantics) + self-test
# -----------------------------------------------------------------------------
def _reference_loss(prediction, target, *, loss_type="RMSE", loss_lambda=1.0,
                    regular_type=None, regular_lambda=0.001, params=None):
    mse = jnp.mean((prediction - target) ** 2)
    mae = jnp.mean(jnp.abs(prediction - target))
    if loss_type == "RMSE":
        loss = jnp.sqrt(mse)
    elif loss_type == "MSE":
        loss = mse
    elif loss_type == "MAE":
        loss = mae
    elif loss_type == "MAE+MSE":
        loss = mae + loss_lambda * mse
    elif loss_type == "MAE+RMSE":
        loss = mae + loss_lambda * jnp.sqrt(mse)
    else:
        raise ValueError(loss_type)
    if regular_type and params:
        if regular_type == "L1":
            reg = sum(jnp.sum(jnp.abs(p)) for p in params)
        elif regular_type == "L2":
            reg = sum(jnp.sum(p ** 2) for p in params)
        elif regular_type == "L1+L2":
            reg = sum(jnp.sum(jnp.abs(p)) + jnp.sum(p ** 2) for p in params)
        else:
            raise ValueError(regular_type)
        loss = loss + regular_lambda * reg
    return loss


if __name__ == "__main__":
    key = jax.random.PRNGKey(0)
    k1, k2, k3, k4, k5, k6, k7, k8 = jax.random.split(key, 8)

    # prediction/target as NCHW activations (B=2, C=4, H=W=16).
    prediction = jax.random.normal(k1, (2, 4, 16, 16), dtype=jnp.float32)
    target = jax.random.normal(k2, (2, 4, 16, 16), dtype=jnp.float32)

    # Synthetic "model" parameters (Linear(32 -> 16)) for the reg branch.
    weight = jax.random.normal(k3, (16, 32), dtype=jnp.float32) * 0.1
    bias = jax.random.normal(k4, (16,), dtype=jnp.float32) * 0.1
    params = [weight, bias]

    # 1) MAE+RMSE with L1+L2 regularization.
    cfg = dict(loss_type="MAE+RMSE", loss_lambda=0.5,
               regular_type="L1+L2", regular_lambda=0.001)
    loss = jax.block_until_ready(
        custom_loss(prediction, target, params=params, **cfg))
    ref = _reference_loss(prediction, target, params=params, **cfg)
    np.testing.assert_allclose(np.asarray(loss), np.asarray(ref),
                               rtol=1e-5, atol=1e-6)

    # 2) Plain RMSE path without regularization.
    loss_rmse = jax.block_until_ready(
        custom_loss(prediction, target, loss_type="RMSE"))
    ref_rmse = _reference_loss(prediction, target, loss_type="RMSE")
    np.testing.assert_allclose(np.asarray(loss_rmse), np.asarray(ref_rmse),
                               rtol=1e-5, atol=1e-6)

    # 3) Non-lane-aligned shape (exercises the tail-pad path) + MSE/L2 branch.
    pred2 = jax.random.normal(k5, (3, 5, 17, 19), dtype=jnp.float32)
    targ2 = jax.random.normal(k6, (3, 5, 17, 19), dtype=jnp.float32)
    cfg2 = dict(loss_type="MAE+MSE", loss_lambda=0.25,
                regular_type="L2", regular_lambda=0.01)
    loss2 = jax.block_until_ready(
        custom_loss(pred2, targ2, params=params, **cfg2))
    ref2 = _reference_loss(pred2, targ2, params=params, **cfg2)
    np.testing.assert_allclose(np.asarray(loss2), np.asarray(ref2),
                               rtol=1e-5, atol=1e-6)

    # 4) Larger input (~1.1M elems): exercises the multi-step streaming grid
    #    with the in-kernel boundary-block row mask (no host-side padding).
    pred3 = jax.random.normal(k7, (2, 4, 384, 360), dtype=jnp.float32)
    targ3 = jax.random.normal(k8, (2, 4, 384, 360), dtype=jnp.float32)
    loss3 = jax.block_until_ready(
        custom_loss(pred3, targ3, loss_type="MAE+RMSE", loss_lambda=0.5))
    ref3 = _reference_loss(pred3, targ3, loss_type="MAE+RMSE", loss_lambda=0.5)
    np.testing.assert_allclose(np.asarray(loss3), np.asarray(ref3),
                               rtol=1e-4, atol=1e-5)

    print("KERNEL_OK")
</pallas_src>

<mosaic_0001>
module attributes {stable_mosaic.version = 11 : i64} {
  func.func @kernel(%arg0: i32, %arg1: i32, %arg2: memref<1xi32, #tpu.memory_space<smem>>, %arg3: memref<16x128xf32, #tpu.memory_space<vmem>>, %arg4: memref<16x128xf32, #tpu.memory_space<vmem>>, %arg5: memref<1x2xf32, #tpu.memory_space<smem>>, %arg6: memref<16x128xf32, #tpu.memory_space<vmem>>, %arg7: memref<16x128xf32, #tpu.memory_space<vmem>>) attributes {dimension_semantics = [#tpu.dimension_semantics<parallel>, #tpu.dimension_semantics<arbitrary>], iteration_bounds = array<i64: 1, 1>, scalar_prefetch = 1 : i64, scratch_operands = 2 : i64, tpu.core_type = #tpu.core_type<tc>, window_params = [{transform_indices = @transform_0, window_bounds = array<i64: 16, 128>}, {transform_indices = @transform_1, window_bounds = array<i64: 16, 128>}, {transform_indices = @transform_2, window_bounds = array<i64: 1, 2>}]} {
    %c0_i32 = arith.constant 0 : i32
    %0 = arith.cmpi eq, %arg1, %c0_i32 : i32
    %1 = arith.extui %0 : i1 to i32
    %c0_i32_0 = arith.constant 0 : i32
    %2 = arith.cmpi ne, %1, %c0_i32_0 : i32
    scf.if %2 {
      %cst_16 = arith.constant 0.000000e+00 : f32
      %28 = vector.broadcast %cst_16 : f32 to vector<16x128xf32>
      %c0_17 = arith.constant 0 : index
      %c0_18 = arith.constant 0 : index
      %29 = vector.load %arg6[%c0_17, %c0_18] : memref<16x128xf32, #tpu.memory_space<vmem>>, vector<16x128xf32>
      tpu.vector_store %arg6[%c0_17, %c0_18], %28 {strides = array<i32>} : memref<16x128xf32, #tpu.memory_space<vmem>>, vector<16x128xf32>,
      %cst_19 = arith.constant 0.000000e+00 : f32
      %30 = vector.broadcast %cst_19 : f32 to vector<16x128xf32>
      %c0_20 = arith.constant 0 : index
      %c0_21 = arith.constant 0 : index
      %31 = vector.load %arg7[%c0_20, %c0_21] : memref<16x128xf32, #tpu.memory_space<vmem>>, vector<16x128xf32>
      tpu.vector_store %arg7[%c0_20, %c0_21], %30 {strides = array<i32>} : memref<16x128xf32, #tpu.memory_space<vmem>>, vector<16x128xf32>,
    } else {
    }
    %c0 = arith.constant 0 : index
    %3 = memref.load %arg2[%c0] : memref<1xi32, #tpu.memory_space<smem>>
    %c1_i32 = arith.constant 1 : i32
    %4 = arith.muli %arg0, %c1_i32 : i32
    %5 = arith.addi %4, %arg1 : i32
    %c16_i32 = arith.constant 16 : i32
    %6 = arith.muli %5, %c16_i32 : i32
    %7 = tpu.iota {dimensions = array<i32: 0>} : vector<16x128xi32>
    %c0_1 = arith.constant 0 : index
    %c0_2 = arith.constant 0 : index
    %8 = vector.load %arg3[%c0_1, %c0_2] : memref<16x128xf32, #tpu.memory_space<vmem>>, vector<16x128xf32>
    %c0_3 = arith.constant 0 : index
    %c0_4 = arith.constant 0 : index
    %9 = vector.load %arg4[%c0_3, %c0_4] : memref<16x128xf32, #tpu.memory_space<vmem>>, vector<16x128xf32>
    %10 = arith.subf %8, %9 : vector<16x128xf32>
    %c0_i32_5 = arith.constant 0 : i32
    %11 = arith.addi %6, %c0_i32_5 : i32
    %12 = arith.subi %3, %11 : i32
    %13 = vector.broadcast %12 : i32 to vector<16x128xi32>
    %14 = arith.cmpi slt, %7, %13 : vector<16x128xi32>
    %cst = arith.constant 0.000000e+00 : f32
    %15 = vector.broadcast %cst : f32 to vector<16x128xf32>
    %16 = arith.select %14, %10, %15 : vector<16x128xi1>, vector<16x128xf32>
    %c0_6 = arith.constant 0 : index
    %c0_7 = arith.constant 0 : index
    %17 = vector.load %arg6[%c0_6, %c0_7] : memref<16x128xf32, #tpu.memory_space<vmem>>, vector<16x128xf32>
    %18 = math.absf %16 : vector<16x128xf32>
    %19 = arith.addf %17, %18 : vector<16x128xf32>
    %c0_8 = arith.constant 0 : index
    %c0_9 = arith.constant 0 : index
    %20 = vector.load %arg6[%c0_8, %c0_9] : memref<16x128xf32, #tpu.memory_space<vmem>>, vector<16x128xf32>
    tpu.vector_store %arg6[%c0_8, %c0_9], %19 {strides = array<i32>} : memref<16x128xf32, #tpu.memory_space<vmem>>, vector<16x128xf32>,
    %c0_10 = arith.constant 0 : index
    %c0_11 = arith.constant 0 : index
    %21 = vector.load %arg7[%c0_10, %c0_11] : memref<16x128xf32, #tpu.memory_space<vmem>>, vector<16x128xf32>
    %22 = arith.mulf %16, %16 : vector<16x128xf32>
    %23 = arith.addf %21, %22 : vector<16x128xf32>
    %c0_12 = arith.constant 0 : index
    %c0_13 = arith.constant 0 : index
    %24 = vector.load %arg7[%c0_12, %c0_13] : memref<16x128xf32, #tpu.memory_space<vmem>>, vector<16x128xf32>
    tpu.vector_store %arg7[%c0_12, %c0_13], %23 {strides = array<i32>} : memref<16x128xf32, #tpu.memory_space<vmem>>, vector<16x128xf32>,
    %c0_i32_14 = arith.constant 0 : i32
    %25 = arith.cmpi eq, %arg1, %c0_i32_14 : i32
    %26 = arith.extui %25 : i1 to i32
    %c0_i32_15 = arith.constant 0 : i32
    %27 = arith.cmpi ne, %26, %c0_i32_15 : i32
    scf.if %27 {
      %c0_16 = arith.constant 0 : index
      %c0_17 = arith.constant 0 : index
      %28 = vector.load %arg6[%c0_16, %c0_17] : memref<16x128xf32, #tpu.memory_space<vmem>>, vector<16x128xf32>
      %29 = vector.shape_cast %28 : vector<16x128xf32> to vector<1x16x128xf32>
      %cst_18 = arith.constant dense<0.000000e+00> : vector<1xf32>
      %30 = vector.multi_reduction <add>, %29, %cst_18 [1, 2] : vector<1x16x128xf32> to vector<1xf32>
      %31 = vector.shape_cast %30 : vector<1xf32> to vector<1x1x1xf32>
      %32 = vector.extract %31[0, 0, 0] : f32 from vector<1x1x1xf32>
      %c0_19 = arith.constant 0 : index
      %c0_20 = arith.constant 0 : index
      %33 = memref.load %arg5[%c0_19, %c0_20] : memref<1x2xf32, #tpu.memory_space<smem>>
      memref.store %32, %arg5[%c0_19, %c0_20] : memref<1x2xf32, #tpu.memory_space<smem>>
      %c0_21 = arith.constant 0 : index
      %c0_22 = arith.constant 0 : index
      %34 = vector.load %arg7[%c0_21, %c0_22] : memref<16x128xf32, #tpu.memory_space<vmem>>, vector<16x128xf32>
      %35 = vector.shape_cast %34 : vector<16x128xf32> to vector<1x16x128xf32>
      %cst_23 = arith.constant dense<0.000000e+00> : vector<1xf32>
      %36 = vector.multi_reduction <add>, %35, %cst_23 [1, 2] : vector<1x16x128xf32> to vector<1xf32>
      %37 = vector.shape_cast %36 : vector<1xf32> to vector<1x1x1xf32>
      %38 = vector.extract %37[0, 0, 0] : f32 from vector<1x1x1xf32>
      %c0_24 = arith.constant 0 : index
      %c1 = arith.constant 1 : index
      %39 = memref.load %arg5[%c0_24, %c1] : memref<1x2xf32, #tpu.memory_space<smem>>
      memref.store %38, %arg5[%c0_24, %c1] : memref<1x2xf32, #tpu.memory_space<smem>>
    } else {
    }
    return
  }
  func.func @transform_0(%arg0: i32, %arg1: i32, %arg2: memref<1xi32, #tpu.memory_space<smem>>) -> (i32, i32) {
    %c1_i32 = arith.constant 1 : i32
    %0 = arith.muli %arg0, %c1_i32 : i32
    %1 = arith.addi %0, %arg1 : i32
    %c0_i32 = arith.constant 0 : i32
    %c0_i32_0 = arith.constant 0 : i32
    return %1, %c0_i32 : i32, i32
  }
  func.func @transform_1(%arg0: i32, %arg1: i32, %arg2: memref<1xi32, #tpu.memory_space<smem>>) -> (i32, i32) {
    %c1_i32 = arith.constant 1 : i32
    %0 = arith.muli %arg0, %c1_i32 : i32
    %1 = arith.addi %0, %arg1 : i32
    %c0_i32 = arith.constant 0 : i32
    %c0_i32_0 = arith.constant 0 : i32
    return %1, %c0_i32 : i32, i32
  }
  func.func @transform_2(%arg0: i32, %arg1: i32, %arg2: memref<1xi32, #tpu.memory_space<smem>>) -> (i32, i32) {
    %c0_i32 = arith.constant 0 : i32
    %c0_i32_0 = arith.constant 0 : i32
    return %arg0, %c0_i32 : i32, i32
  }
}

</mosaic_0001>

<bundles_post_ra>
// kernel: _pairwise_sums.1
= control target key start
LH: loop header
LB: loop body
LE: loop exit
PB: predicated region body
PF: predicated region fallthrough
CT: control target
= control target key end

     0   :  { %v69_v0 = vlaneseq  ;;  %s216_s0 = inlined_call_operand.<no memory space> [shape: s32[1], index: 0, kind: input, shape index: {}]   ;;  %s217_s1 = inlined_call_operand.vmem [shape: f32[16,128], index: 1, kind: input, shape index: {}]   ;;  %s218_s2 = inlined_call_operand.vmem [shape: f32[16,128], index: 2, kind: input, shape index: {}]   ;;  %s219_s3 = inlined_call_operand.vmem [shape: f32[1,2], index: 3, kind: output, shape index: {}]  }
   0x1   :  { %v72_v1 = vld [vmem:[%s217_s1] sm:$0xff]  ;;  %v73_v2 = vld [vmem:[%s217_s1 + $0x8] sm:$0xff]  ;;  %v79_v6 = vstv %s216_s0 }
   0x2   :  { %v74_v3 = vld [vmem:[%s218_s2] sm:$0xff]  ;;  %v75_v4 = vld [vmem:[%s218_s2 + $0x8] sm:$0xff] }
   0x3   :  { %v76_v5 = vsub.f32 %v72_v1, %v74_v3 }
   0x4   :  { %9 = vsyncpa [#allocation7], 0  ;;  %v70_v7 = vshrl.u32 %v69_v0, 7  ;;  %v77_v8 = vsub.f32 %v73_v2, %v75_v4  ;;  %s137_s22 = sshll.u32 %s219_s3, 4  ;;  %s138_s22 = int_to_ptr.vmem [resolvable:$true] %s137_s22 }
   0x5   :  { %s163_s24 = scalar_lea.vmem %s138_s22, 16  ;;  %p168_p1 = scmp.lt.s32.totalorder %s138_s22, %s138_s22 }
   0x6   :  { %v71_v9 = vadd.s32 8, %v70_v7  ;;  %vm80_vm0 = vcmp.lt.s32.totalorder %v70_v7, %v79_v6  ;;  %p164_p0 = scmp.ne.s32.totalorder %s138_s22, %s163_s24  ;;  %p169_p2 = scmp.lt.s32.totalorder %s163_s24, %s163_s24 }
   0x7   :  { %v82_v10 = vsel %vm80_vm0, %v76_v5, 0.0 }
   0x8   :  { %vm81_vm1 = vcmp.lt.s32.totalorder %v71_v9, %v79_v6  ;;  %v86_v11 = vand.u32 2147483647, %v82_v10  ;;  %v94_v14 = vmul.f32 %v82_v10, %v82_v10  ;;  %p170_p3 = por %p169_p2, %p168_p1 }
   0x9   :  { %v83_v12 = vsel %vm81_vm1, %v77_v8, 0.0 }
   0xa   :  { %v87_v13 = vand.u32 2147483647, %v83_v12  ;;  %v95_v15 = vmul.f32 %v83_v12, %v83_v12  ;;  %p171_p4 = pnand %p170_p3, %p164_p0 }
   0xc   :  { %v105_v16 = vadd.f32 %v87_v13, %v86_v11  ;;  %v119_v17 = vadd.f32 %v95_v15, %v94_v14 }
   0xe   :  { %106 = vadd.xlane.f32.xlu0 %v105_v16 }
  0x12   :  { %120 = vadd.xlane.f32.xlu0 %v119_v17 }
  0x9b   :  { %v107_v18 = vpop.xlane.xlu0 %106 }
  0x9c   :  { %v108_v19 = vrot.slane %v107_v18, 4 }
  0x9e   :  { %v109_v20 = vadd.f32 %v108_v19, %v107_v18 }
  0x9f   :  { %v121_v21 = vpop.xlane.xlu0 %120 }
  0xa0   :  { %v110_v22 = vrot.slane %v109_v20, 2  ;;  %v122_v23 = vrot.slane %v121_v21, 4 }
  0xa2   :  { %v123_v24 = vadd.f32 %v122_v23, %v121_v21  ;;  %v111_v25 = vadd.f32 %v110_v22, %v109_v20 }
  0xa4   :  { %v124_v26 = vrot.slane %v123_v24, 2  ;;  %v112_v27 = vrot.slane %v111_v25, 1 }
  0xa6   :  { %v125_v28 = vadd.f32 %v124_v26, %v123_v24  ;;  %v113_v29 = vadd.f32 %v112_v27, %v111_v25 }
  0xa8   :  { %158 = vpush %v113_v29  ;;  %v126_v30 = vrot.slane %v125_v28, 1 }
  0xaa   :  { %v127_v31 = vadd.f32 %v126_v30, %v125_v28 }
  0xac   :  { %160 = vpush %v127_v31 }
  0xd9   :  { %s159_s0 = spop %158 }
  0xda   :  { %116 = sst [smem:[#allocation6]] %s159_s0 }
  0xdd   :  { %s161_s23 = spop %160 }
  0xde   :  { %130 = sst [smem:[#allocation6 + $0x1]] %s161_s23 }
  0xdf   :  { %174 = shalt.err (!%p171_p4)
}
  0xe0   :  { %s177_s25 = smov [#allocation6]  }
  0xe1   :  { %140 = dma.smem_to_vmem %s177_s25, 16, %s138_s22, [#allocation7]  }
  0xe2   :  { %175 = dma.done.wait [#allocation7], 16  }
  0xe3   :  { %176 = vsyncadd [#allocation7], 4294967280 }
  0xe4   :  { %144 = sfence }
  0xe5   :  { %145 = vsyncpa [#allocation7], 1 }

</bundles_post_ra>
